<compile_context>
chip_gen: v7x
topology: tpu7x:2x2x1
jax: 0.10.0
libtpu: 0.0.40
codegen_flags: <defaults>
</compile_context>

<pallas_src>
import functools

import jax
import jax.numpy as jnp
from jax.experimental import pallas as pl
from jax.experimental.pallas import tpu as pltpu

_LANE = 128
_MIB = 1024 * 1024


# ------------------------------ helpers -------------------------------------

def _round_up(n, m):
    return ((n + m - 1) // m) * m


def _pad2d(x, rows, cols):
    r, c = x.shape
    return jnp.pad(x, ((0, rows - r), (0, cols - c)))


def _vmem_limit_bytes():
    # Generation-aware scoped-VMEM budget: 3/4 of physical VMEM
    # (~96 MiB on v5e/v6e, ~48 MiB on v7x).  Safe fallback if the query fails.
    try:
        cap = int(pltpu.get_tpu_info().vmem_capacity_bytes)
    except Exception:
        cap = 64 * _MIB
    return (cap * 3) // 4


def _pick_tiles(np0, tile_m, tile_k):
    # Pad N only to a multiple of tm; pick tk as the largest multiple of tm
    # that divides the padded N and is <= tile_k (no lcm(tm, tk) blow-up).
    tm = min(_round_up(tile_m, _LANE), np0)
    np_ = _round_up(np0, tm)
    kt = np_ // tm
    max_chunks = max(1, tile_k // tm)
    chunks = 1
    for d in range(1, kt + 1):
        if kt % d == 0 and d <= max_chunks:
            chunks = d
    tk = chunks * tm
    return tm, tk, np_


def _build_adjacency(edge_index, num_nodes, n_pad, dtype, add_remaining_self_loops):
    # Dense edge-count matrix built ONCE, directly at the padded shape and in
    # the streaming dtype.  A[i, j] = #edges j -> i (PyG sum aggregation at
    # the target node); small integer counts are exact in bf16.
    src = edge_index[0].astype(jnp.int32)
    dst = edge_index[1].astype(jnp.int32)
    ones = jnp.ones(src.shape, dtype)
    a = jnp.zeros((n_pad, n_pad), dtype).at[dst, src].add(ones)
    if add_remaining_self_loops:
        # PyG gcn_norm uses add_remaining_self_loops: keep existing loops,
        # add weight-1 loops only where missing (real nodes only).
        idx = jnp.arange(num_nodes, dtype=jnp.int32)
        diag = a[idx, idx]
        a = a.at[idx, idx].set(jnp.where(diag > 0, diag, jnp.ones_like(diag)))
    return a


# ----------------------------- Pallas kernels --------------------------------

def _xw_kernel(x_ref, w_ref, o_ref):
    # Small projection X @ W, row-tiled, hoisted out of the A-stream loop.
    o_ref[...] = jnp.dot(x_ref[...], w_ref[...],
                         preferred_element_type=jnp.float32).astype(o_ref.dtype)


def _xw_scaled_kernel(x_ref, w_ref, s_ref, o_ref):
    # o = s * (X @ W); row scale s is (tm, 1) (D^-1/2 for GCN).
    xw = jnp.dot(x_ref[...], w_ref[...], preferred_element_type=jnp.float32)
    o_ref[...] = (s_ref[...] * xw).astype(o_ref.dtype)


def _rhs_block(rhs_ref, k, tk, resident):
    # Resident RHS: whole array lives in VMEM, slice the current k rows.
    # Streamed RHS: the BlockSpec already delivers the (tk, width) tile.
    if resident:
        start = pl.multiple_of(k * tk, tk)
        return rhs_ref[pl.ds(start, tk), :]
    return rhs_ref[...]


def _gcn_agg_kernel(a_ref, rhs_ref, dinv_ref, b_ref, o_ref, *, tk, rhs_resident):
    # out[i] = dinv[i] * sum_k Ahat[i, k] @ (dinv * XW)[k] + b
    # The f32 output block is resident across the k axis -> accumulate in it.
    k = pl.program_id(1)

    @pl.when(k == 0)
    def _():
        o_ref[...] = jnp.zeros_like(o_ref)

    o_ref[...] += jnp.dot(a_ref[...], _rhs_block(rhs_ref, k, tk, rhs_resident),
                          preferred_element_type=jnp.float32)

    @pl.when(k == pl.num_programs(1) - 1)
    def _():
        o_ref[...] = dinv_ref[...] * o_ref[...] + b_ref[...]


def _gin_agg_kernel(a_ref, rhs_ref, xw_ref, b_ref, eps_ref, o_ref, *, tk,
                    rhs_resident):
    # Linearity of the single Linear layer:
    #   out[i] = (1 + eps) * XW[i] + sum_k A[i, k] @ XW[k] + b
    k = pl.program_id(1)

    @pl.when(k == 0)
    def _():
        o_ref[...] = jnp.zeros_like(o_ref)

    o_ref[...] += jnp.dot(a_ref[...], _rhs_block(rhs_ref, k, tk, rhs_resident),
                          preferred_element_type=jnp.float32)

    @pl.when(k == pl.num_programs(1) - 1)
    def _():
        eps = eps_ref[0]                                   # scalar from SMEM
        o_ref[...] = (o_ref[...]
                      + (1.0 + eps) * xw_ref[...].astype(jnp.float32)
                      + b_ref[...])


def _gin_wide_kernel(a_ref, rhs_ref, xi_ref, w_ref, b_ref, eps_ref, o_ref,
                     acc_ref, *, tk, rhs_resident):
    # c_out > c_in: stream A against X (width c_in), apply W once per row
    # tile in the epilogue:  out = ((1+eps)*x + A@x) @ W + b
    k = pl.program_id(1)

    @pl.when(k == 0)
    def _():
        acc_ref[...] = jnp.zeros_like(acc_ref)

    acc_ref[...] += jnp.dot(a_ref[...], _rhs_block(rhs_ref, k, tk, rhs_resident),
                            preferred_element_type=jnp.float32)

    @pl.when(k == pl.num_programs(1) - 1)
    def _():
        eps = eps_ref[0]
        h = (1.0 + eps) * xi_ref[...] + acc_ref[...]       # f32 VPU epilogue
        o_ref[...] = jnp.dot(h, w_ref[...],
                             preferred_element_type=jnp.float32) + b_ref[...]


# ------------------------------ JAX wrapper ----------------------------------

@functools.partial(
    jax.jit,
    static_argnames=("conv_type", "num_nodes", "tile_m", "tile_k", "use_bf16",
                     "force_stream_rhs"))
def graph_conv_forward(x, edge_index, params, *, conv_type, num_nodes,
                       tile_m=512, tile_k=2048, use_bf16=True,
                       force_stream_rhs=False):
    """Forward pass of GRAPH_CONV for conv_type in {'gcn', 'gin'}."""
    n, c_in = x.shape
    w = params["weight"]          # [C_in, C_out]
    b = params["bias"]            # [1, C_out]
    c_out = w.shape[1]

    mm_dtype = jnp.bfloat16 if use_bf16 else jnp.float32
    mm_itemsize = jnp.dtype(mm_dtype).itemsize

    # Lane-dense padding: feature dims to multiples of 128; node dim padded
    # only to the row-tile size (tk is chosen to divide the padded N).
    cin_p = _round_up(c_in, _LANE)
    cout_p = _round_up(c_out, _LANE)
    np0 = _round_up(num_nodes, _LANE)
    tm, tk, np_ = _pick_tiles(np0, tile_m, tile_k)

    vmem_limit = _vmem_limit_bytes()
    mosaic = functools.partial(pltpu.CompilerParams,
                               vmem_limit_bytes=vmem_limit)

    x_p = _pad2d(x.astype(jnp.float32), np_, cin_p)
    w_p = _pad2d(w.astype(jnp.float32), cin_p, cout_p)
    b_p = _pad2d(b.astype(jnp.float32), 1, cout_p)

    grid = (np_ // tm, np_ // tk)
    out_shape = jax.ShapeDtypeStruct((np_, cout_p), jnp.float32)

    def rhs_specs(width_p):
        # Resident RHS (single DMA, stays in VMEM for the whole grid) when it
        # fits a quarter of the VMEM budget; otherwise stream (tk, width)
        # tiles along k.
        rhs_bytes = np_ * width_p * mm_itemsize
        resident = (not force_stream_rhs) and rhs_bytes <= vmem_limit // 4
        if resident:
            spec = pl.BlockSpec((np_, width_p), lambda i, k: (0, 0))
        else:
            spec = pl.BlockSpec((tk, width_p), lambda i, k: (k, 0))
        return spec, resident

    def project(kernel, *operands, extra_specs=()):
        # Small row-tiled X @ W projection (hoisted out of the A-stream loop).
        return pl.pallas_call(
            kernel,
            out_shape=jax.ShapeDtypeStruct((np_, cout_p), mm_dtype),
            grid=(np_ // tm,),
            in_specs=[pl.BlockSpec((tm, cin_p), lambda i: (i, 0)),
                      pl.BlockSpec((cin_p, cout_p), lambda i: (0, 0)),
                      *extra_specs],
            out_specs=pl.BlockSpec((tm, cout_p), lambda i: (i, 0)),
            compiler_params=mosaic(dimension_semantics=("parallel",)),
        )(*operands)

    if conv_type == "gcn":
        # GCNConv: out = D^-1/2 (A + I_remaining) D^-1/2 X W + b
        # Normalization factored out of the streamed matrix: the stream is the
        # exact integer edge-count adjacency; D^-1/2 is applied to XW rows up
        # front and to the output rows in the f32 epilogue.
        a = _build_adjacency(edge_index, num_nodes, np_, mm_dtype,
                             add_remaining_self_loops=True)
        deg = jnp.sum(a, axis=1, dtype=jnp.float32)
        dinv = jnp.where(deg > 0, 1.0 / jnp.sqrt(deg), 0.0).reshape(np_, 1)

        xw = project(_xw_scaled_kernel, x_p, w_p, dinv,
                     extra_specs=(pl.BlockSpec((tm, 1), lambda i: (i, 0)),))

        rhs_spec, resident = rhs_specs(cout_p)
        out = pl.pallas_call(
            functools.partial(_gcn_agg_kernel, tk=tk, rhs_resident=resident),
            out_shape=out_shape,
            grid=grid,
            in_specs=[pl.BlockSpec((tm, tk), lambda i, k: (i, k)),      # A
                      rhs_spec,                                          # dinv*XW
                      pl.BlockSpec((tm, 1), lambda i, k: (i, 0)),        # dinv rows
                      pl.BlockSpec((1, cout_p), lambda i, k: (0, 0))],   # bias
            out_specs=pl.BlockSpec((tm, cout_p), lambda i, k: (i, 0)),
            compiler_params=mosaic(
                dimension_semantics=("parallel", "arbitrary")),
        )(a, xw, dinv, b_p)
        return out[:n, :c_out]

    elif conv_type == "gin":
        # GINConv(Linear): out = ((1 + eps) * x + sum_{j in N(i)} x_j) @ W + b
        a = _build_adjacency(edge_index, num_nodes, np_, mm_dtype,
                             add_remaining_self_loops=False)
        eps = params["eps"].reshape(1).astype(jnp.float32)

        if cout_p <= cin_p:
            # Exploit linearity: out = (1+eps)*XW + A @ XW + b (XW hoisted),
            # so A streams against the narrower XW (width c_out).
            xw = project(_xw_kernel, x_p, w_p)
            rhs_spec, resident = rhs_specs(cout_p)
            out = pl.pallas_call(
                functools.partial(_gin_agg_kernel, tk=tk, rhs_resident=resident),
                out_shape=out_shape,
                grid=grid,
                in_specs=[pl.BlockSpec((tm, tk), lambda i, k: (i, k)),     # A
                          rhs_spec,                                         # XW
                          pl.BlockSpec((tm, cout_p), lambda i, k: (i, 0)),  # XW rows
                          pl.BlockSpec((1, cout_p), lambda i, k: (0, 0)),   # bias
                          pl.BlockSpec(memory_space=pltpu.MemorySpace.SMEM)],  # eps
                out_specs=pl.BlockSpec((tm, cout_p), lambda i, k: (i, 0)),
                compiler_params=mosaic(
                    dimension_semantics=("parallel", "arbitrary")),
            )(a, xw, xw, b_p, eps)
        else:
            # c_out > c_in: cheaper to stream A against X (width c_in) and
            # apply W once per row tile in the epilogue.
            x_mm = x_p.astype(mm_dtype)
            rhs_spec, resident = rhs_specs(cin_p)
            out = pl.pallas_call(
                functools.partial(_gin_wide_kernel, tk=tk, rhs_resident=resident),
                out_shape=out_shape,
                grid=grid,
                in_specs=[pl.BlockSpec((tm, tk), lambda i, k: (i, k)),       # A
                          rhs_spec,                                           # X stream
                          pl.BlockSpec((tm, cin_p), lambda i, k: (i, 0)),     # X rows f32
                          pl.BlockSpec((cin_p, cout_p), lambda i, k: (0, 0)), # W
                          pl.BlockSpec((1, cout_p), lambda i, k: (0, 0)),     # bias
                          pl.BlockSpec(memory_space=pltpu.MemorySpace.SMEM)], # eps
                out_specs=pl.BlockSpec((tm, cout_p), lambda i, k: (i, 0)),
                scratch_shapes=[pltpu.VMEM((tm, cin_p), jnp.float32)],
                compiler_params=mosaic(
                    dimension_semantics=("parallel", "arbitrary")),
            )(a, x_mm, x_p, w_p, b_p, eps)
        return out[:n, :c_out]

    else:
        # TODO(synk): 'agnn' branch (Linear + AGNNConv attention propagation) not implemented.
        raise NotImplementedError(f"conv_type={conv_type!r}")


def init_params(key, in_channels, out_channels):
    kw, kb = jax.random.split(key)
    limit = (6.0 / (in_channels + out_channels)) ** 0.5
    weight = jax.random.uniform(kw, (in_channels, out_channels), jnp.float32,
                                minval=-limit, maxval=limit)
    bias = jax.random.uniform(kb, (1, out_channels), jnp.float32,
                              minval=-0.1, maxval=0.1)
    eps = jnp.zeros((1,), jnp.float32)   # GINConv initial eps = 0
    return {"weight": weight, "bias": bias, "eps": eps}


# ------------------------- plain-JAX f32 references ---------------------------

def _ref_counts(edge_index, num_nodes, add_remaining_self_loops):
    src, dst = edge_index[0], edge_index[1]
    a = jnp.zeros((num_nodes, num_nodes), jnp.float32).at[dst, src].add(1.0)
    if add_remaining_self_loops:
        idx = jnp.arange(num_nodes)
        diag = a[idx, idx]
        a = a.at[idx, idx].set(jnp.where(diag > 0, diag, 1.0))
    return a


def _ref_gcn(x, edge_index, params, num_nodes):
    a = _ref_counts(edge_index, num_nodes, True)
    deg = a.sum(axis=1)
    dinv = jnp.where(deg > 0, 1.0 / jnp.sqrt(deg), 0.0)
    an = dinv[:, None] * a * dinv[None, :]
    return an @ (x @ params["weight"]) + params["bias"]


def _ref_gin(x, edge_index, params, num_nodes):
    a = _ref_counts(edge_index, num_nodes, False)
    agg = (1.0 + params["eps"][0]) * x + a @ x
    return agg @ params["weight"] + params["bias"]


# --------------------------------- main ---------------------------------------

if __name__ == "__main__":
    key = jax.random.PRNGKey(0)
    k_x, k_e, k_p, k_p2 = jax.random.split(key, 4)

    num_nodes = 16
    in_channels = 32
    out_channels = 32
    num_edges = 40

    x = jax.random.normal(k_x, (num_nodes, in_channels), jnp.float32)
    edge_index = jax.random.randint(k_e, (2, num_edges), 0, num_nodes,
                                    dtype=jnp.int32)
    params = init_params(k_p, in_channels, out_channels)

    out_gcn = graph_conv_forward(x, edge_index, params,
                                 conv_type="gcn", num_nodes=num_nodes)
    out_gin = graph_conv_forward(x, edge_index, params,
                                 conv_type="gin", num_nodes=num_nodes)
    # Streamed-RHS code path (taken automatically when the RHS exceeds the
    # VMEM-residency budget on large graphs).
    out_gcn_s = graph_conv_forward(x, edge_index, params,
                                   conv_type="gcn", num_nodes=num_nodes,
                                   force_stream_rhs=True)
    # Wide-GIN path (c_out > c_in): stream X, apply W in the epilogue.
    wide_out = 160
    params_w = init_params(k_p2, in_channels, wide_out)
    out_gin_w = graph_conv_forward(x, edge_index, params_w,
                                   conv_type="gin", num_nodes=num_nodes)

    jax.block_until_ready((out_gcn, out_gin, out_gcn_s, out_gin_w))

    assert out_gcn.shape == (num_nodes, out_channels)
    assert out_gin.shape == (num_nodes, out_channels)
    assert out_gcn_s.shape == (num_nodes, out_channels)
    assert out_gin_w.shape == (num_nodes, wide_out)

    ref_gcn = _ref_gcn(x, edge_index, params, num_nodes)
    ref_gin = _ref_gin(x, edge_index, params, num_nodes)
    ref_gin_w = _ref_gin(x, edge_index, params_w, num_nodes)
    # A is exact in bf16 (integer counts, normalization factored out); the
    # remaining error is bf16 rounding of the streamed XW / X.
    assert jnp.allclose(out_gcn, ref_gcn, rtol=5e-2, atol=5e-2)
    assert jnp.allclose(out_gcn_s, ref_gcn, rtol=5e-2, atol=5e-2)
    assert jnp.allclose(out_gin, ref_gin, rtol=5e-2, atol=5e-2)
    assert jnp.allclose(out_gin_w, ref_gin_w, rtol=5e-2, atol=5e-2)

    print("KERNEL_OK")
</pallas_src>

<mosaic_0001>
module attributes {stable_mosaic.version = 11 : i64} {
  func.func @_xw_scaled_kernel(%arg0: i32, %arg1: memref<128x128xf32, #tpu.memory_space<vmem>>, %arg2: memref<128x128xf32, #tpu.memory_space<vmem>>, %arg3: memref<128x1xf32, #tpu.memory_space<vmem>>, %arg4: memref<128x128xbf16, #tpu.memory_space<vmem>>) attributes {dimension_semantics = [#tpu.dimension_semantics<parallel>], iteration_bounds = array<i64: 1>, scalar_prefetch = 0 : i64, scratch_operands = 0 : i64, tpu.core_type = #tpu.core_type<tc>, window_params = [{transform_indices = @transform_0, window_bounds = array<i64: 128, 128>}, {pipeline_mode = #tpu.pipeline_mode<synchronous>, transform_indices = @transform_1, window_bounds = array<i64: 128, 128>}, {transform_indices = @transform_2, window_bounds = array<i64: 128, 1>}, {transform_indices = @transform_3, window_bounds = array<i64: 128, 128>}]} {
    %c0 = arith.constant 0 : index
    %c0_0 = arith.constant 0 : index
    %0 = vector.load %arg1[%c0, %c0_0] : memref<128x128xf32, #tpu.memory_space<vmem>>, vector<128x128xf32>
    %c0_1 = arith.constant 0 : index
    %c0_2 = arith.constant 0 : index
    %1 = vector.load %arg2[%c0_1, %c0_2] : memref<128x128xf32, #tpu.memory_space<vmem>>, vector<128x128xf32>
    %cst = arith.constant dense<0.000000e+00> : vector<128x128xf32>
    %2 = tpu.matmul %0, %1, %cst {dimension_numbers = #tpu.dot_dimension_numbers<[1], [0], [0], [1], [0, 0, 1, 1], [], []>} : vector<128x128xf32>, vector<128x128xf32>, vector<128x128xf32> -> vector<128x128xf32>
    %c0_3 = arith.constant 0 : index
    %c0_4 = arith.constant 0 : index
    %3 = vector.load %arg3[%c0_3, %c0_4] : memref<128x1xf32, #tpu.memory_space<vmem>>, vector<128x1xf32>
    %4 = vector.broadcast %3 : vector<128x1xf32> to vector<128x128xf32>
    %5 = arith.mulf %4, %2 : vector<128x128xf32>
    %6 = arith.truncf %5 : vector<128x128xf32> to vector<128x128xbf16>
    %c0_5 = arith.constant 0 : index
    %c0_6 = arith.constant 0 : index
    %7 = vector.load %arg4[%c0_5, %c0_6] : memref<128x128xbf16, #tpu.memory_space<vmem>>, vector<128x128xbf16>
    tpu.vector_store %arg4[%c0_5, %c0_6], %6 {strides = array<i32>} : memref<128x128xbf16, #tpu.memory_space<vmem>>, vector<128x128xbf16>,
    return
  }
  func.func @transform_0(%arg0: i32) -> (i32, i32) {
    %c0_i32 = arith.constant 0 : i32
    %c0_i32_0 = arith.constant 0 : i32
    return %arg0, %c0_i32 : i32, i32
  }
  func.func @transform_1(%arg0: i32) -> (i32, i32) {
    %c0_i32 = arith.constant 0 : i32
    %c0_i32_0 = arith.constant 0 : i32
    %c0_i32_1 = arith.constant 0 : i32
    return %c0_i32, %c0_i32_0 : i32, i32
  }
  func.func @transform_2(%arg0: i32) -> (i32, i32) {
    %c0_i32 = arith.constant 0 : i32
    %c0_i32_0 = arith.constant 0 : i32
    return %arg0, %c0_i32 : i32, i32
  }
  func.func @transform_3(%arg0: i32) -> (i32, i32) {
    %c0_i32 = arith.constant 0 : i32
    %c0_i32_0 = arith.constant 0 : i32
    return %arg0, %c0_i32 : i32, i32
  }
}

module attributes {stable_mosaic.version = 11 : i64} {
  func.func @_gcn_agg_kernel(%arg0: i32, %arg1: i32, %arg2: memref<128x128xbf16, #tpu.memory_space<vmem>>, %arg3: memref<128x128xbf16, #tpu.memory_space<vmem>>, %arg4: memref<128x1xf32, #tpu.memory_space<vmem>>, %arg5: memref<1x128xf32, #tpu.memory_space<vmem>>, %arg6: memref<128x128xf32, #tpu.memory_space<vmem>>) attributes {dimension_semantics = [#tpu.dimension_semantics<parallel>, #tpu.dimension_semantics<arbitrary>], iteration_bounds = array<i64: 1, 1>, scalar_prefetch = 0 : i64, scratch_operands = 0 : i64, tpu.core_type = #tpu.core_type<tc>, window_params = [{transform_indices = @transform_0, window_bounds = array<i64: 128, 128>}, {pipeline_mode = #tpu.pipeline_mode<synchronous>, transform_indices = @transform_1, window_bounds = array<i64: 128, 128>}, {transform_indices = @transform_2, window_bounds = array<i64: 128, 1>}, {pipeline_mode = #tpu.pipeline_mode<synchronous>, transform_indices = @transform_3, window_bounds = array<i64: 1, 128>}, {transform_indices = @transform_4, window_bounds = array<i64: 128, 128>}]} {
    %c0_i32 = arith.constant 0 : i32
    %0 = arith.cmpi eq, %arg1, %c0_i32 : i32
    %1 = arith.extui %0 : i1 to i32
    %c0_i32_0 = arith.constant 0 : i32
    %2 = arith.cmpi ne, %1, %c0_i32_0 : i32
    scf.if %2 {
      %cst_9 = arith.constant 0.000000e+00 : f32
      %15 = vector.broadcast %cst_9 : f32 to vector<128x128xf32>
      %c0_10 = arith.constant 0 : index
      %c0_11 = arith.constant 0 : index
      %16 = vector.load %arg6[%c0_10, %c0_11] : memref<128x128xf32, #tpu.memory_space<vmem>>, vector<128x128xf32>
      tpu.vector_store %arg6[%c0_10, %c0_11], %15 {strides = array<i32>} : memref<128x128xf32, #tpu.memory_space<vmem>>, vector<128x128xf32>,
    } else {
    }
    %c0 = arith.constant 0 : index
    %c0_1 = arith.constant 0 : index
    %3 = vector.load %arg6[%c0, %c0_1] : memref<128x128xf32, #tpu.memory_space<vmem>>, vector<128x128xf32>
    %c0_2 = arith.constant 0 : index
    %c0_3 = arith.constant 0 : index
    %4 = vector.load %arg2[%c0_2, %c0_3] : memref<128x128xbf16, #tpu.memory_space<vmem>>, vector<128x128xbf16>
    %c128_i32 = arith.constant 128 : i32
    %5 = arith.muli %arg1, %c128_i32 : i32
    %6 = tpu.assume_multiple %5, 128 : i32
    %7 = arith.index_cast %6 : i32 to index
    %c0_4 = arith.constant 0 : index
    %8 = vector.load %arg3[%7, %c0_4] : memref<128x128xbf16, #tpu.memory_space<vmem>>, vector<128x128xbf16>
    %cst = arith.constant dense<0.000000e+00> : vector<128x128xf32>
    %9 = tpu.matmul %4, %8, %cst {dimension_numbers = #tpu.dot_dimension_numbers<[1], [0], [0], [1], [0, 0, 1, 1], [], []>} : vector<128x128xbf16>, vector<128x128xbf16>, vector<128x128xf32> -> vector<128x128xf32>
    %10 = arith.addf %3, %9 : vector<128x128xf32>
    %c0_5 = arith.constant 0 : index
    %c0_6 = arith.constant 0 : index
    %11 = vector.load %arg6[%c0_5, %c0_6] : memref<128x128xf32, #tpu.memory_space<vmem>>, vector<128x128xf32>
    tpu.vector_store %arg6[%c0_5, %c0_6], %10 {strides = array<i32>} : memref<128x128xf32, #tpu.memory_space<vmem>>, vector<128x128xf32>,
    %c0_i32_7 = arith.constant 0 : i32
    %12 = arith.cmpi eq, %arg1, %c0_i32_7 : i32
    %13 = arith.extui %12 : i1 to i32
    %c0_i32_8 = arith.constant 0 : i32
    %14 = arith.cmpi ne, %13, %c0_i32_8 : i32
    scf.if %14 {
      %c0_9 = arith.constant 0 : index
      %c0_10 = arith.constant 0 : index
      %15 = vector.load %arg4[%c0_9, %c0_10] : memref<128x1xf32, #tpu.memory_space<vmem>>, vector<128x1xf32>
      %c0_11 = arith.constant 0 : index
      %c0_12 = arith.constant 0 : index
      %16 = vector.load %arg6[%c0_11, %c0_12] : memref<128x128xf32, #tpu.memory_space<vmem>>, vector<128x128xf32>
      %17 = vector.broadcast %15 : vector<128x1xf32> to vector<128x128xf32>
      %18 = arith.mulf %17, %16 : vector<128x128xf32>
      %c0_13 = arith.constant 0 : index
      %c0_14 = arith.constant 0 : index
      %19 = vector.load %arg5[%c0_13, %c0_14] : memref<1x128xf32, #tpu.memory_space<vmem>>, vector<1x128xf32>
      %20 = vector.broadcast %19 : vector<1x128xf32> to vector<128x128xf32>
      %21 = arith.addf %18, %20 : vector<128x128xf32>
      %c0_15 = arith.constant 0 : index
      %c0_16 = arith.constant 0 : index
      %22 = vector.load %arg6[%c0_15, %c0_16] : memref<128x128xf32, #tpu.memory_space<vmem>>, vector<128x128xf32>
      tpu.vector_store %arg6[%c0_15, %c0_16], %21 {strides = array<i32>} : memref<128x128xf32, #tpu.memory_space<vmem>>, vector<128x128xf32>,
    } else {
    }
    return
  }
  func.func @transform_0(%arg0: i32, %arg1: i32) -> (i32, i32) {
    %c0_i32 = arith.constant 0 : i32
    return %arg0, %arg1 : i32, i32
  }
  func.func @transform_1(%arg0: i32, %arg1: i32) -> (i32, i32) {
    %c0_i32 = arith.constant 0 : i32
    %c0_i32_0 = arith.constant 0 : i32
    %c0_i32_1 = arith.constant 0 : i32
    return %c0_i32, %c0_i32_0 : i32, i32
  }
  func.func @transform_2(%arg0: i32, %arg1: i32) -> (i32, i32) {
    %c0_i32 = arith.constant 0 : i32
    %c0_i32_0 = arith.constant 0 : i32
    return %arg0, %c0_i32 : i32, i32
  }
  func.func @transform_3(%arg0: i32, %arg1: i32) -> (i32, i32) {
    %c0_i32 = arith.constant 0 : i32
    %c0_i32_0 = arith.constant 0 : i32
    %c0_i32_1 = arith.constant 0 : i32
    return %c0_i32, %c0_i32_0 : i32, i32
  }
  func.func @transform_4(%arg0: i32, %arg1: i32) -> (i32, i32) {
    %c0_i32 = arith.constant 0 : i32
    %c0_i32_0 = arith.constant 0 : i32
    return %arg0, %c0_i32 : i32, i32
  }
}

</mosaic_0001>

<bundles_post_ra>
// kernel: graph_conv_forward.2
= control target key start
LH: loop header
LB: loop body
LE: loop exit
PB: predicated region body
PF: predicated region fallthrough
CT: control target
= control target key end

     0   :  { %v605_v3 = vmov 0   ;;  %s794_s1 = inlined_call_operand.vmem [shape: f32[128,128], index: 1, kind: input, shape index: {}]   ;;  %s795_s0 = inlined_call_operand.vmem [shape: f32[128,128], index: 0, kind: input, shape index: {}]   ;;  %s796_s2 = inlined_call_operand.vmem [shape: f32[128,1], index: 2, kind: input, shape index: {}]   ;;  %s797_s3 = inlined_call_operand.vmem [shape: bf16[128,128], index: 3, kind: output, shape index: {}]  }
   0x1   :  { %v30_v0 = vld [vmem:[%s794_s1] sm:$0xff]  ;;  %v31_v1 = vld [vmem:[%s794_s1 + $0x8] sm:$0xff]  ;;  %v32_v2 = vld [vmem:[%s794_s1 + $0x10] sm:$0xff]  ;;  %604 = vset.pattern.permute.xlu1 %v605_v3  ;;  %603 = vset.pattern.permute.xlu0 %v605_v3 }
   0x2   :  { %v554_v4 = vpack.c.bf16 %v31_v1, %v30_v0  ;;  %v33_v5 = vld [vmem:[%s794_s1 + $0x18] sm:$0xff]  ;;  %v34_v7 = vld [vmem:[%s794_s1 + $0x20] sm:$0xff]  ;;  %v35_v8 = vld [vmem:[%s794_s1 + $0x28] sm:$0xff] }
   0x3   :  { %v558_v6 = vpack.c.bf16 %v33_v5, %v32_v2  ;;  %v562_v9 = vpack.c.bf16 %v35_v8, %v34_v7  ;;  %v14_v10 = vld [vmem:[%s795_s0] sm:$0xff]  ;;  %v36_v12 = vld [vmem:[%s794_s1 + $0x30] sm:$0xff]  ;;  %v37_v13 = vld [vmem:[%s794_s1 + $0x38] sm:$0xff] }
   0x4   :  { %555 = vmatprep.subr.bf16.mxu0 %v554_v4  ;;  %586 = vmatprep.subr.bf16.mxu1 %v554_v4  ;;  %v22_v11 = vld [vmem:[%s795_s0 + $0x40] sm:$0xff]  ;;  %v566_v14 = vpack.c.bf16 %v37_v13, %v36_v12  ;;  %v39_v16 = vld [vmem:[%s794_s1 + $0x48] sm:$0xff]  ;;  %v193_v17 = vld [vmem:[%s796_s2 + $0x10] sm:$0xff] }
   0x5   :  { %557 = vmatpush3.bf16.msra.mxu0 %v554_v4  ;;  %594 = vmatpush3.bf16.msra.mxu1 %v554_v4  ;;  %v38_v15 = vld [vmem:[%s794_s1 + $0x40] sm:$0xff]  ;;  %v194_v19 = vld [vmem:[%s796_s2 + $0x18] sm:$0xff]  ;;  %v40_v21 = vld [vmem:[%s794_s1 + $0x50] sm:$0xff] }
   0x6   :  { %559 = vmatprep.subr.bf16.mxu0 %v558_v6  ;;  %587 = vmatprep.subr.bf16.mxu1 %v558_v6  ;;  %v191_v18 = vld [vmem:[%s796_s2] sm:$0xff]  ;;  %v570_v20 = vpack.c.bf16 %v39_v16, %v38_v15  ;;  %v41_v22 = vld [vmem:[%s794_s1 + $0x58] sm:$0xff]  ;;  %v192_v23 = vld [vmem:[%s796_s2 + $0x8] sm:$0xff] }
   0x7   :  { %530 = vmatprep.mubr.f32.mxu0 %v14_v10  ;;  %542 = vmatprep.mubr.f32.mxu1 %v22_v11  ;;  %v196_v24 = vld [vmem:[%s796_s2 + $0x28] sm:$0xff]  ;;  %v574_v25 = vpack.c.bf16 %v41_v22, %v40_v21  ;;  %v42_v26 = vld [vmem:[%s794_s1 + $0x60] sm:$0xff]  ;;  %v198_v29 = vld [vmem:[%s796_s2 + $0x38] sm:$0xff] }
   0x8   :  { %219 = vperm.xlu1 %604, %v193_v17   ;;  %209 = vperm.xlu0 %603, %v191_v18   ;;  %v43_v27 = vld [vmem:[%s794_s1 + $0x68] sm:$0xff]  ;;  %v195_v28 = vld [vmem:[%s796_s2 + $0x20] sm:$0xff]  ;;  %v44_v31 = vld [vmem:[%s794_s1 + $0x70] sm:$0xff] }
   0x9   :  { %561 = vmatpush3.bf16.msra.mxu0 %v558_v6  ;;  %595 = vmatpush3.bf16.msra.mxu1 %v558_v6  ;;  %v578_v30 = vpack.c.bf16 %v43_v27, %v42_v26  ;;  %v45_v32 = vld [vmem:[%s794_s1 + $0x78] sm:$0xff]  ;;  %v197_v33 = vld [vmem:[%s796_s2 + $0x30] sm:$0xff]  ;;  %v200_v34 = vld [vmem:[%s796_s2 + $0x48] sm:$0xff] }
   0xa   :  { %563 = vmatprep.subr.bf16.mxu0 %v562_v9  ;;  %588 = vmatprep.subr.bf16.mxu1 %v562_v9  ;;  %v582_v35 = vpack.c.bf16 %v45_v32, %v44_v31  ;;  %v199_v36 = vld [vmem:[%s796_s2 + $0x40] sm:$0xff]  ;;  %v202_v37 = vld [vmem:[%s796_s2 + $0x58] sm:$0xff]  ;;  %v201_v38 = vld [vmem:[%s796_s2 + $0x50] sm:$0xff] }
   0xb   :  { %v15_v39 = vld [vmem:[%s795_s0 + $0x8] sm:$0xff]  ;;  %v16_v41 = vld [vmem:[%s795_s0 + $0x10] sm:$0xff]  ;;  %v203_v44 = vld [vmem:[%s796_s2 + $0x60] sm:$0xff] }
   0xc   :  { %224 = vperm.xlu1 %604, %v194_v19   ;;  %214 = vperm.xlu0 %603, %v192_v23   ;;  %v23_v40 = vld [vmem:[%s795_s0 + $0x48] sm:$0xff]  ;;  %v24_v42 = vld [vmem:[%s795_s0 + $0x50] sm:$0xff]  ;;  %v17_v45 = vld [vmem:[%s795_s0 + $0x18] sm:$0xff] }
   0xd   :  { %565 = vmatpush3.bf16.msra.mxu0 %v562_v9  ;;  %596 = vmatpush3.bf16.msra.mxu1 %v562_v9  ;;  %v204_v43 = vld [vmem:[%s796_s2 + $0x68] sm:$0xff]  ;;  %v25_v46 = vld [vmem:[%s795_s0 + $0x58] sm:$0xff]  ;;  %v18_v47 = vld [vmem:[%s795_s0 + $0x20] sm:$0xff] }
   0xe   :  { %567 = vmatprep.subr.bf16.mxu0 %v566_v14  ;;  %589 = vmatprep.subr.bf16.mxu1 %v566_v14  ;;  %v26_v48 = vld [vmem:[%s795_s0 + $0x60] sm:$0xff]  ;;  %v206_v49 = vld [vmem:[%s796_s2 + $0x78] sm:$0xff]  ;;  %v205_v50 = vld [vmem:[%s796_s2 + $0x70] sm:$0xff] }
   0xf   :  { %v19_v51 = vld [vmem:[%s795_s0 + $0x28] sm:$0xff]  ;;  %v20_v53 = vld [vmem:[%s795_s0 + $0x30] sm:$0xff]  ;;  %v21_v55 = vld [vmem:[%s795_s0 + $0x38] sm:$0xff] }
  0x10   :  { %234 = vperm.xlu1 %604, %v196_v24   ;;  %229 = vperm.xlu0 %603, %v195_v28   ;;  %v27_v52 = vld [vmem:[%s795_s0 + $0x68] sm:$0xff]  ;;  %v28_v54 = vld [vmem:[%s795_s0 + $0x70] sm:$0xff]  ;;  %v29_v56 = vld [vmem:[%s795_s0 + $0x78] sm:$0xff] }
  0x11   :  { %569 = vmatpush3.bf16.msra.mxu0 %v566_v14  ;;  %597 = vmatpush3.bf16.msra.mxu1 %v566_v14 }
  0x12   :  { %571 = vmatprep.subr.bf16.mxu0 %v570_v20  ;;  %590 = vmatprep.subr.bf16.mxu1 %v570_v20 }
  0x14   :  { %244 = vperm.xlu1 %604, %v198_v29   ;;  %239 = vperm.xlu0 %603, %v197_v33  }
  0x15   :  { %573 = vmatpush3.bf16.msra.mxu0 %v570_v20  ;;  %598 = vmatpush3.bf16.msra.mxu1 %v570_v20 }
  0x16   :  { %575 = vmatprep.subr.bf16.mxu0 %v574_v25  ;;  %591 = vmatprep.subr.bf16.mxu1 %v574_v25 }
  0x18   :  { %254 = vperm.xlu1 %604, %v200_v34   ;;  %249 = vperm.xlu0 %603, %v199_v36  }
  0x19   :  { %577 = vmatpush3.bf16.msra.mxu0 %v574_v25  ;;  %599 = vmatpush3.bf16.msra.mxu1 %v574_v25 }
  0x1a   :  { %579 = vmatprep.subr.bf16.mxu0 %v578_v30  ;;  %592 = vmatprep.subr.bf16.mxu1 %v578_v30 }
  0x1c   :  { %264 = vperm.xlu1 %604, %v202_v37   ;;  %259 = vperm.xlu0 %603, %v201_v38  }
  0x1d   :  { %581 = vmatpush3.bf16.msra.mxu0 %v578_v30  ;;  %600 = vmatpush3.bf16.msra.mxu1 %v578_v30 }
  0x1e   :  { %583 = vmatprep.subr.bf16.mxu0 %v582_v35  ;;  %593 = vmatprep.subr.bf16.mxu1 %v582_v35 }
  0x20   :  { %274 = vperm.xlu1 %604, %v204_v43   ;;  %269 = vperm.xlu0 %603, %v203_v44  }
  0x21   :  { %585 = vmatpush3.bf16.msra.mxu0 %v582_v35  ;;  %601 = vmatpush3.bf16.msra.mxu1 %v582_v35 }
  0x24   :  { %531 = vmatmul.mubr.f32.vlgmr.msra.gmra.mrb[0].mxu0 %v15_v39  ;;  %543 = vmatmul.mubr.f32.vlgmr.msra.gmra.mrb[0].mxu1 %v23_v40 }
  0x25   :  { %533 = vmatprep.mubr.f32.mxu0 %v16_v41  ;;  %545 = vmatprep.mubr.f32.mxu1 %v24_v42 }
  0x26   :  { %284 = vperm.xlu1 %604, %v206_v49   ;;  %279 = vperm.xlu0 %603, %v205_v50  }
  0x28   :  { %534 = vmatmul.mubr.f32.gmra.mrb[2].mxu0 %v17_v45  ;;  %546 = vmatmul.mubr.f32.gmra.mrb[2].mxu1 %v25_v46 }
  0x29   :  { %536 = vmatprep.mubr.f32.mxu0 %v18_v47  ;;  %548 = vmatprep.mubr.f32.mxu1 %v26_v48 }
  0x2c   :  { %537 = vmatmul.mubr.f32.gmra.mrb[4].mxu0 %v19_v51  ;;  %549 = vmatmul.mubr.f32.gmra.mrb[4].mxu1 %v27_v52 }
  0x2d   :  { %539 = vmatprep.mubr.f32.mxu0 %v20_v53  ;;  %551 = vmatprep.mubr.f32.mxu1 %v28_v54 }
  0x30   :  { %540 = vmatmul.mubr.f32.gmra.mrb[6].mxu0 %v21_v55  ;;  %552 = vmatmul.mubr.f32.gmra.mrb[6].mxu1 %v29_v56 }
  0x87   :  { %v220_v57 = vpop.permute.xlu1 %219  ;;  %v210_v58 = vpop.permute.xlu0 %209 }
  0x8b   :  { %v225_v59 = vpop.permute.xlu1 %224  ;;  %v215_v60 = vpop.permute.xlu0 %214 }
  0x8f   :  { %v235_v61 = vpop.permute.xlu1 %234  ;;  %v230_v62 = vpop.permute.xlu0 %229 }
  0x93   :  { %v245_v63 = vpop.permute.xlu1 %244  ;;  %v240_v0 = vpop.permute.xlu0 %239 }
  0x97   :  { %v255_v1 = vpop.permute.xlu1 %254  ;;  %v250_v2 = vpop.permute.xlu0 %249 }
  0x9b   :  { %v265_v3 = vpop.permute.xlu1 %264  ;;  %v260_v4 = vpop.permute.xlu0 %259 }
  0x9f   :  { %v275_v13 = vpop.permute.xlu1 %274  ;;  %v270_v14 = vpop.permute.xlu0 %269 }
  0xa5   :  { %v285_v35 = vpop.permute.xlu1 %284  ;;  %v280_v36 = vpop.permute.xlu0 %279 }
  0xf7   :  { %v532_v5 = vpop.f32.mrb[0].mxu0  ;;  %v544_v6 = vpop.f32.mrb[0].mxu1 }
  0xf8   :  { %v288_v7 = vmul.f32 %v532_v5, %v215_v60  ;;  %v296_v8 = vmul.f32 %v544_v6, %v255_v1  ;;  %v112_v9 = vpop.f32.mrb[1].mxu0  ;;  %v152_v10 = vpop.f32.mrb[1].mxu1 }
  0xf9   :  { %v287_v11 = vmul.f32 %v210_v58, %v112_v9  ;;  %v295_v12 = vmul.f32 %v250_v2, %v152_v10 }
  0xfb   :  { %v422_v15 = vpack.c.bf16 %v288_v7, %v287_v11  ;;  %v442_v16 = vpack.c.bf16 %v296_v8, %v295_v12  ;;  %v535_v17 = vpop.f32.mrb[2].mxu0  ;;  %v547_v18 = vpop.f32.mrb[2].mxu1 }
  0xfc   :  { %v290_v19 = vmul.f32 %v535_v17, %v225_v59  ;;  %v298_v20 = vmul.f32 %v547_v18, %v265_v3  ;;  %v122_v21 = vpop.f32.mrb[3].mxu0  ;;  %v162_v22 = vpop.f32.mrb[3].mxu1 }
  0xfd   :  { %423 = vst [vmem:[%s797_s3] sm:$0xff] %v422_v15   ;;  %462 = vst [vmem:[%s797_s3 + $0x20] sm:$0xff] %v442_v16   ;;  %v289_v23 = vmul.f32 %v220_v57, %v122_v21  ;;  %v297_v24 = vmul.f32 %v260_v4, %v162_v22 }
  0xff   :  { %v427_v25 = vpack.c.bf16 %v290_v19, %v289_v23  ;;  %v447_v26 = vpack.c.bf16 %v298_v20, %v297_v24  ;;  %v538_v27 = vpop.f32.mrb[4].mxu0  ;;  %v550_v28 = vpop.f32.mrb[4].mxu1 }
 0x100   :  { %v292_v29 = vmul.f32 %v538_v27, %v235_v61  ;;  %v300_v30 = vmul.f32 %v550_v28, %v275_v13  ;;  %v132_v31 = vpop.f32.mrb[5].mxu0  ;;  %v172_v32 = vpop.f32.mrb[5].mxu1 }
 0x101   :  { %459 = vst [vmem:[%s797_s3 + $0x8] sm:$0xff] %v427_v25   ;;  %463 = vst [vmem:[%s797_s3 + $0x28] sm:$0xff] %v447_v26   ;;  %v291_v33 = vmul.f32 %v230_v62, %v132_v31  ;;  %v299_v34 = vmul.f32 %v270_v14, %v172_v32 }
 0x103   :  { %v432_v37 = vpack.c.bf16 %v292_v29, %v291_v33  ;;  %v452_v38 = vpack.c.bf16 %v300_v30, %v299_v34  ;;  %v541_v39 = vpop.f32.mrb[6].mxu0  ;;  %v553_v40 = vpop.f32.mrb[6].mxu1 }
 0x104   :  { %v294_v41 = vmul.f32 %v541_v39, %v245_v63  ;;  %v302_v42 = vmul.f32 %v553_v40, %v285_v35  ;;  %v142_v43 = vpop.f32.mrb[7].mxu0  ;;  %v182_v44 = vpop.f32.mrb[7].mxu1 }
 0x105   :  { %460 = vst [vmem:[%s797_s3 + $0x10] sm:$0xff] %v432_v37   ;;  %464 = vst [vmem:[%s797_s3 + $0x30] sm:$0xff] %v452_v38   ;;  %v293_v45 = vmul.f32 %v240_v0, %v142_v43  ;;  %v301_v46 = vmul.f32 %v280_v36, %v182_v44 }
 0x107   :  { %v437_v47 = vpack.c.bf16 %v294_v41, %v293_v45  ;;  %v457_v48 = vpack.c.bf16 %v302_v42, %v301_v46 }
 0x109   :  { %461 = vst [vmem:[%s797_s3 + $0x18] sm:$0xff] %v437_v47   ;;  %465 = vst [vmem:[%s797_s3 + $0x38] sm:$0xff] %v457_v48  }

// kernel: graph_conv_forward.3
= control target key start
LH: loop header
LB: loop body
LE: loop exit
PB: predicated region body
PF: predicated region fallthrough
CT: control target
= control target key end

     0   :  { %v593_v1 = vmov 0   ;;  %s769_s1 = inlined_call_operand.vmem [shape: bf16[128,128], index: 1, kind: input, shape index: {}]   ;;  %s770_s0 = inlined_call_operand.vmem [shape: bf16[128,128], index: 0, kind: input, shape index: {}]   ;;  %s771_s2 = inlined_call_operand.vmem [shape: f32[128,1], index: 2, kind: input, shape index: {}]   ;;  %s772_s3 = inlined_call_operand.vmem [shape: f32[1,128], index: 3, kind: input, shape index: {}]   ;;  %s773_s4 = inlined_call_operand.vmem [shape: f32[128,128], index: 4, kind: output, shape index: {}]  }
   0x1   :  { %v577_v0 = vld [vmem:[%s769_s1] sm:$0xff]   ;;  %576 = vset.pattern.permute.xlu1 %v593_v1  ;;  %575 = vset.pattern.permute.xlu0 %v593_v1  ;;  %v578_v2 = vld [vmem:[%s769_s1 + $0x8] sm:$0xff]   ;;  %v579_v3 = vld [vmem:[%s769_s1 + $0x10] sm:$0xff]  }
   0x2   :  { %525 = vmatprep.subr.bf16.mxu0 %v577_v0  ;;  %557 = vmatprep.subr.bf16.mxu1 %v577_v0  ;;  %v580_v4 = vld [vmem:[%s769_s1 + $0x18] sm:$0xff]   ;;  %v585_v5 = vld [vmem:[%s770_s0] sm:$0xff]   ;;  %v582_v8 = vld [vmem:[%s769_s1 + $0x28] sm:$0xff]  }
   0x3   :  { %526 = vmatpush3.bf16.msra.mxu0 %v577_v0  ;;  %565 = vmatpush3.bf16.msra.mxu1 %v577_v0  ;;  %v586_v6 = vld [vmem:[%s770_s0 + $0x20] sm:$0xff]   ;;  %v321_v9 = vld [vmem:[%s771_s2 + $0x10] sm:$0xff]  ;;  %v322_v11 = vld [vmem:[%s771_s2 + $0x18] sm:$0xff] }
   0x4   :  { %527 = vmatprep.subr.bf16.mxu0 %v578_v2  ;;  %558 = vmatprep.subr.bf16.mxu1 %v578_v2  ;;  %v581_v7 = vld [vmem:[%s769_s1 + $0x20] sm:$0xff]   ;;  %v320_v12 = vld [vmem:[%s771_s2 + $0x8] sm:$0xff]  ;;  %v583_v13 = vld [vmem:[%s769_s1 + $0x30] sm:$0xff]  }
   0x5   :  { %541 = vmatprep.mubr.bf16.mxu0 %v585_v5  ;;  %549 = vmatprep.mubr.bf16.mxu1 %v586_v6  ;;  %v319_v10 = vld [vmem:[%s771_s2] sm:$0xff]  ;;  %v324_v14 = vld [vmem:[%s771_s2 + $0x28] sm:$0xff]  ;;  %v584_v16 = vld [vmem:[%s769_s1 + $0x38] sm:$0xff]  }
   0x6   :  { %363 = vperm.xlu1 %576, %v321_v9   ;;  %353 = vperm.xlu0 %575, %v319_v10   ;;  %v323_v15 = vld [vmem:[%s771_s2 + $0x20] sm:$0xff]  ;;  %v326_v17 = vld [vmem:[%s771_s2 + $0x38] sm:$0xff]  ;;  %v325_v18 = vld [vmem:[%s771_s2 + $0x30] sm:$0xff] }
   0x7   :  { %528 = vmatpush3.bf16.msra.mxu0 %v578_v2  ;;  %566 = vmatpush3.bf16.msra.mxu1 %v578_v2  ;;  %v587_v19 = vld [vmem:[%s770_s0 + $0x8] sm:$0xff]   ;;  %v327_v22 = vld [vmem:[%s771_s2 + $0x40] sm:$0xff]  ;;  %v589_v23 = vld [vmem:[%s770_s0 + $0x10] sm:$0xff]  }
   0x8   :  { %529 = vmatprep.subr.bf16.mxu0 %v579_v3  ;;  %559 = vmatprep.subr.bf16.mxu1 %v579_v3  ;;  %v588_v20 = vld [vmem:[%s770_s0 + $0x28] sm:$0xff]   ;;  %v590_v24 = vld [vmem:[%s770_s0 + $0x30] sm:$0xff]   ;;  %v330_v25 = vld [vmem:[%s771_s2 + $0x58] sm:$0xff] }
   0x9   :  { %v328_v21 = vld [vmem:[%s771_s2 + $0x48] sm:$0xff]  ;;  %v329_v26 = vld [vmem:[%s771_s2 + $0x50] sm:$0xff]  ;;  %v591_v27 = vld [vmem:[%s770_s0 + $0x18] sm:$0xff]  }
   0xa   :  { %368 = vperm.xlu1 %576, %v322_v11   ;;  %358 = vperm.xlu0 %575, %v320_v12   ;;  %v592_v28 = vld [vmem:[%s770_s0 + $0x38] sm:$0xff]   ;;  %v332_v29 = vld [vmem:[%s771_s2 + $0x68] sm:$0xff]  ;;  %v331_v30 = vld [vmem:[%s771_s2 + $0x60] sm:$0xff] }
   0xb   :  { %530 = vmatpush3.bf16.msra.mxu0 %v579_v3  ;;  %567 = vmatpush3.bf16.msra.mxu1 %v579_v3  ;;  %v334_v31 = vld [vmem:[%s771_s2 + $0x78] sm:$0xff]  ;;  %v333_v32 = vld [vmem:[%s771_s2 + $0x70] sm:$0xff]  ;;  %v508_v50 = vld [vmem:[%s772_s3] ss:$0 sm:$0xff] }
   0xc   :  { %531 = vmatprep.subr.bf16.mxu0 %v580_v4  ;;  %560 = vmatprep.subr.bf16.mxu1 %v580_v4 }
   0xe   :  { %378 = vperm.xlu1 %576, %v324_v14   ;;  %373 = vperm.xlu0 %575, %v323_v15  }
   0xf   :  { %532 = vmatpush3.bf16.msra.mxu0 %v580_v4  ;;  %568 = vmatpush3.bf16.msra.mxu1 %v580_v4 }
  0x10   :  { %533 = vmatprep.subr.bf16.mxu0 %v581_v7  ;;  %561 = vmatprep.subr.bf16.mxu1 %v581_v7 }
  0x12   :  { %388 = vperm.xlu1 %576, %v326_v17   ;;  %383 = vperm.xlu0 %575, %v325_v18  }
  0x13   :  { %534 = vmatpush3.bf16.msra.mxu0 %v581_v7  ;;  %569 = vmatpush3.bf16.msra.mxu1 %v581_v7 }
  0x14   :  { %535 = vmatprep.subr.bf16.mxu0 %v582_v8  ;;  %562 = vmatprep.subr.bf16.mxu1 %v582_v8 }
  0x16   :  { %398 = vperm.xlu1 %576, %v328_v21   ;;  %393 = vperm.xlu0 %575, %v327_v22  }
  0x17   :  { %536 = vmatpush3.bf16.msra.mxu0 %v582_v8  ;;  %570 = vmatpush3.bf16.msra.mxu1 %v582_v8 }
  0x18   :  { %537 = vmatprep.subr.bf16.mxu0 %v583_v13  ;;  %563 = vmatprep.subr.bf16.mxu1 %v583_v13 }
  0x1a   :  { %408 = vperm.xlu1 %576, %v330_v25   ;;  %403 = vperm.xlu0 %575, %v329_v26  }
  0x1b   :  { %538 = vmatpush3.bf16.msra.mxu0 %v583_v13  ;;  %571 = vmatpush3.bf16.msra.mxu1 %v583_v13 }
  0x1c   :  { %539 = vmatprep.subr.bf16.mxu0 %v584_v16  ;;  %564 = vmatprep.subr.bf16.mxu1 %v584_v16 }
  0x1e   :  { %418 = vperm.xlu1 %576, %v332_v29   ;;  %413 = vperm.xlu0 %575, %v331_v30  }
  0x1f   :  { %540 = vmatpush3.bf16.msra.mxu0 %v584_v16  ;;  %572 = vmatpush3.bf16.msra.mxu1 %v584_v16 }
  0x22   :  { %542 = vmatmul.mubr.bf16.vlgmr.msra.gmra.mrb[0].mxu0 %v587_v19  ;;  %550 = vmatmul.mubr.bf16.vlgmr.msra.gmra.mrb[0].mxu1 %v588_v20 }
  0x23   :  { %545 = vmatprep.mubr.bf16.mxu0 %v589_v23  ;;  %553 = vmatprep.mubr.bf16.mxu1 %v590_v24 }
  0x24   :  { %428 = vperm.xlu1 %576, %v334_v31   ;;  %423 = vperm.xlu0 %575, %v333_v32  }
  0x2a   :  { %546 = vmatmul.mubr.bf16.gmra.mrb[4].mxu0 %v591_v27  ;;  %554 = vmatmul.mubr.bf16.gmra.mrb[4].mxu1 %v592_v28 }
  0x85   :  { %v354_v33 = vpop.permute.xlu0 %353  ;;  %v364_v34 = vpop.permute.xlu1 %363 }
  0x89   :  { %v359_v35 = vpop.permute.xlu0 %358  ;;  %v369_v36 = vpop.permute.xlu1 %368 }
  0x8d   :  { %v374_v37 = vpop.permute.xlu0 %373  ;;  %v715_v38 = vpop.permute.xlu1 %378 }
  0x91   :  { %v384_v39 = vpop.permute.xlu0 %383  ;;  %v389_v40 = vpop.permute.xlu1 %388 }
  0x95   :  { %v394_v41 = vpop.permute.xlu0 %393  ;;  %v399_v42 = vpop.permute.xlu1 %398 }
  0x99   :  { %v404_v43 = vpop.permute.xlu0 %403  ;;  %v409_v44 = vpop.permute.xlu1 %408 }
  0x9d   :  { %v414_v45 = vpop.permute.xlu0 %413  ;;  %v419_v63 = vpop.permute.xlu1 %418 }
  0xa3   :  { %v424_v4 = vpop.permute.xlu0 %423  ;;  %v429_v19 = vpop.permute.xlu1 %428 }
  0xf5   :  { %v543_v46 = vpop.f32.mrb[0].mxu0  ;;  %v551_v47 = vpop.f32.mrb[0].mxu1 }
  0xf6   :  { %v221_v48 = vpop.f32.mrb[1].mxu0  ;;  %v253_v49 = vpop.f32.mrb[1].mxu1  ;;  %v433_v53 = vmul.f32 %v543_v46, %v364_v34  ;;  %v441_v54 = vmul.f32 %v551_v47, %v404_v43 }
  0xf7   :  { %v544_v51 = vpop.f32.mrb[2].mxu0  ;;  %v552_v52 = vpop.f32.mrb[2].mxu1  ;;  %v431_v57 = vmul.f32 %v354_v33, %v221_v48  ;;  %v439_v58 = vmul.f32 %v394_v41, %v253_v49 }
  0xf8   :  { %v224_v55 = vpop.f32.mrb[3].mxu0  ;;  %v256_v56 = vpop.f32.mrb[3].mxu1  ;;  %v456_v59 = vadd.f32 %v508_v50, %v433_v53  ;;  %v464_v60 = vadd.f32 %v508_v50, %v441_v54  ;;  %v434_v61 = vmul.f32 %v544_v51, %v369_v36  ;;  %v442_v62 = vmul.f32 %v552_v52, %v409_v44 }
  0xf9   :  { %v454_v0 = vadd.f32 %v508_v50, %v431_v57  ;;  %v462_v1 = vadd.f32 %v508_v50, %v439_v58  ;;  %v432_v2 = vmul.f32 %v359_v35, %v224_v55  ;;  %v440_v3 = vmul.f32 %v399_v42, %v256_v56 }
  0xfa   :  { %472 = vst [vmem:[%s773_s4 + $0x10] sm:$0xff] %v456_v59  ;;  %480 = vst [vmem:[%s773_s4 + $0x50] sm:$0xff] %v464_v60  ;;  %v457_v5 = vadd.f32 %v508_v50, %v434_v61  ;;  %v465_v6 = vadd.f32 %v508_v50, %v442_v62 }
  0xfb   :  { %470 = vst [vmem:[%s773_s4] sm:$0xff] %v454_v0  ;;  %478 = vst [vmem:[%s773_s4 + $0x40] sm:$0xff] %v462_v1  ;;  %v455_v7 = vadd.f32 %v508_v50, %v432_v2  ;;  %v463_v8 = vadd.f32 %v508_v50, %v440_v3 }
  0xfc   :  { %473 = vst [vmem:[%s773_s4 + $0x18] sm:$0xff] %v457_v5  ;;  %481 = vst [vmem:[%s773_s4 + $0x58] sm:$0xff] %v465_v6 }
  0xfd   :  { %v547_v9 = vpop.f32.mrb[4].mxu0  ;;  %v555_v10 = vpop.f32.mrb[4].mxu1  ;;  %471 = vst [vmem:[%s773_s4 + $0x8] sm:$0xff] %v455_v7  ;;  %479 = vst [vmem:[%s773_s4 + $0x48] sm:$0xff] %v463_v8 }
  0xfe   :  { %v237_v11 = vpop.f32.mrb[5].mxu0  ;;  %v269_v12 = vpop.f32.mrb[5].mxu1  ;;  %v437_v15 = vmul.f32 %v547_v9, %v384_v39  ;;  %v445_v16 = vmul.f32 %v555_v10, %v424_v4 }
  0xff   :  { %v548_v13 = vpop.f32.mrb[6].mxu0  ;;  %v556_v14 = vpop.f32.mrb[6].mxu1  ;;  %v435_v20 = vmul.f32 %v374_v37, %v237_v11  ;;  %v443_v21 = vmul.f32 %v414_v45, %v269_v12 }
 0x100   :  { %v240_v17 = vpop.f32.mrb[7].mxu0  ;;  %v272_v18 = vpop.f32.mrb[7].mxu1  ;;  %v460_v22 = vadd.f32 %v508_v50, %v437_v15  ;;  %v468_v23 = vadd.f32 %v508_v50, %v445_v16  ;;  %v438_v24 = vmul.f32 %v548_v13, %v389_v40  ;;  %v446_v25 = vmul.f32 %v556_v14, %v429_v19 }
 0x101   :  { %v458_v26 = vadd.f32 %v508_v50, %v435_v20  ;;  %v466_v27 = vadd.f32 %v508_v50, %v443_v21  ;;  %v436_v28 = vmul.f32 %v715_v38, %v240_v17  ;;  %v444_v29 = vmul.f32 %v419_v63, %v272_v18 }
 0x102   :  { %476 = vst [vmem:[%s773_s4 + $0x30] sm:$0xff] %v460_v22  ;;  %484 = vst [vmem:[%s773_s4 + $0x70] sm:$0xff] %v468_v23  ;;  %v461_v30 = vadd.f32 %v508_v50, %v438_v24  ;;  %v469_v31 = vadd.f32 %v508_v50, %v446_v25 }
 0x103   :  { %474 = vst [vmem:[%s773_s4 + $0x20] sm:$0xff] %v458_v26  ;;  %482 = vst [vmem:[%s773_s4 + $0x60] sm:$0xff] %v466_v27  ;;  %v459_v32 = vadd.f32 %v508_v50, %v436_v28  ;;  %v467_v33 = vadd.f32 %v508_v50, %v444_v29 }
 0x104   :  { %477 = vst [vmem:[%s773_s4 + $0x38] sm:$0xff] %v461_v30  ;;  %485 = vst [vmem:[%s773_s4 + $0x78] sm:$0xff] %v469_v31 }
 0x105   :  { %475 = vst [vmem:[%s773_s4 + $0x28] sm:$0xff] %v459_v32  ;;  %483 = vst [vmem:[%s773_s4 + $0x68] sm:$0xff] %v467_v33 }

</bundles_post_ra>
